<compile_context>
chip_gen: v6e
topology: v6e:2x2x1
jax: 0.10.0
libtpu: 0.0.40
codegen_flags: <defaults>
</compile_context>

<pallas_src>
import functools

import jax
import jax.numpy as jnp
from jax.experimental import pallas as pl
from jax.experimental.pallas import tpu as pltpu


def _convt_silu_kernel(x_ref, w_ref, b_ref, o_ref):
    # x_ref: (Cin, tile)        bf16  -- columns = flattened (h, w) pixels
    # w_ref: (KH*KW*Cout, Cin)  bf16  -- row r = (kh*KW + kw)*Cout + cout
    # b_ref: (KH*KW*Cout, 1)    f32
    # o_ref: (KH*KW*Cout, tile) f32
    y = jnp.dot(w_ref[...], x_ref[...], preferred_element_type=jnp.float32)
    y = y + b_ref[...]
    o_ref[...] = jax.nn.sigmoid(y) * y  # SiLU in f32


def pack_conv_transpose_params(weight, bias):
    """One-time (parameter-init time) packing.

    weight: (Cin, Cout, KH, KW) f32  ->  (KH*KW*Cout, Cin) bf16
    bias:   (Cout,)             f32  ->  (KH*KW*Cout, 1)   f32
    """
    Cin, Cout, KH, KW = weight.shape
    w_packed = jnp.transpose(weight, (2, 3, 1, 0)).reshape(KH * KW * Cout, Cin)
    w_packed = w_packed.astype(jnp.bfloat16)
    b_packed = jnp.tile(bias, KH * KW).reshape(KH * KW * Cout, 1).astype(jnp.float32)
    return w_packed, b_packed


@functools.partial(jax.jit, static_argnames=("Cout", "KH", "KW"))
def conv_transpose2d_silu(x_nchw, w_packed, b_packed, *, Cout, KH, KW):
    """x_nchw: (1, Cin, H, W) f32; packed params from pack_conv_transpose_params."""
    N, Cin, H, W = x_nchw.shape
    assert N == 1  # the free NCHW -> (Cin, H*W) view relies on batch == 1

    M_in = H * W
    R = KH * KW * Cout

    # Free view of NCHW (N == 1) + bf16 cast in the wrapper (halves the input DMA).
    x2 = x_nchw.reshape(Cin, M_in).astype(jnp.bfloat16)

    # 2-way column split: lane-dense (>=128-wide) tiles, and both TensorCores on v7x.
    n_col = 2 if (M_in % 256 == 0) else 1
    tile = M_in // n_col

    out2 = pl.pallas_call(
        _convt_silu_kernel,
        out_shape=jax.ShapeDtypeStruct((R, M_in), jnp.float32),
        grid=(n_col,),
        in_specs=[
            pl.BlockSpec((Cin, tile), lambda j: (0, j)),
            pl.BlockSpec((R, Cin), lambda j: (0, 0)),
            pl.BlockSpec((R, 1), lambda j: (0, 0)),
        ],
        out_specs=pl.BlockSpec((R, tile), lambda j: (0, j)),
        compiler_params=pltpu.CompilerParams(
            dimension_semantics=("parallel",)),
    )(x2, w_packed, b_packed)

    # Cheap XLA interleave: (kh, kw, cout, h, w) -> (cout, KH*h+kh, KW*w+kw).
    y5 = out2.reshape(KH, KW, Cout, H, W)
    y = jnp.transpose(y5, (2, 3, 0, 4, 1)).reshape(1, Cout, KH * H, KW * W)
    return y


if __name__ == "__main__":
    key = jax.random.PRNGKey(0)
    kx, kwgt, kb = jax.random.split(key, 3)

    N, Cin, H, W = 1, 64, 16, 16
    Cout, KH, KW = 64, 2, 2

    x1 = jax.random.normal(kx, (N, Cin, H, W), dtype=jnp.float32)

    # Deterministic PyTorch-style init: uniform with bound 1/sqrt(Cin*KH*KW).
    bound = 1.0 / (Cin * KH * KW) ** 0.5
    weight = jax.random.uniform(kwgt, (Cin, Cout, KH, KW), jnp.float32, -bound, bound)
    bias = jax.random.uniform(kb, (Cout,), jnp.float32, -bound, bound)

    w_packed, b_packed = pack_conv_transpose_params(weight, bias)

    out = conv_transpose2d_silu(x1, w_packed, b_packed, Cout=Cout, KH=KH, KW=KW)
    out = jax.block_until_ready(out)
    assert out.shape == (N, Cout, KH * H, KW * W), out.shape

    # Numerical sanity check against a pure-JAX reference (kernel uses bf16 MXU operands).
    t = jnp.einsum("nchw,cdkl->ndhkwl", x1, weight, precision=jax.lax.Precision.HIGHEST)
    ref = t.reshape(N, Cout, KH * H, KW * W) + bias[None, :, None, None]
    ref = jax.nn.sigmoid(ref) * ref
    err = jnp.max(jnp.abs(out - ref))
    assert err < 5e-2, float(err)

    print("KERNEL_OK")
</pallas_src>

<mosaic_0001>
module attributes {stable_mosaic.version = 11 : i64} {
  func.func @_convt_silu_kernel(%arg0: i32, %arg1: memref<64x128xbf16, #tpu.memory_space<vmem>>, %arg2: memref<256x64xbf16, #tpu.memory_space<vmem>>, %arg3: memref<256x1xf32, #tpu.memory_space<vmem>>, %arg4: memref<256x128xf32, #tpu.memory_space<vmem>>) attributes {dimension_semantics = [#tpu.dimension_semantics<parallel>], iteration_bounds = array<i64: 2>, scalar_prefetch = 0 : i64, scratch_operands = 0 : i64, tpu.core_type = #tpu.core_type<tc>, window_params = [{transform_indices = @transform_0, window_bounds = array<i64: 64, 128>}, {pipeline_mode = #tpu.pipeline_mode<synchronous>, transform_indices = @transform_1, window_bounds = array<i64: 256, 64>}, {pipeline_mode = #tpu.pipeline_mode<synchronous>, transform_indices = @transform_2, window_bounds = array<i64: 256, 1>}, {transform_indices = @transform_3, window_bounds = array<i64: 256, 128>}]} {
    %c0 = arith.constant 0 : index
    %c0_0 = arith.constant 0 : index
    %0 = vector.load %arg2[%c0, %c0_0] : memref<256x64xbf16, #tpu.memory_space<vmem>>, vector<256x64xbf16>
    %c0_1 = arith.constant 0 : index
    %c0_2 = arith.constant 0 : index
    %1 = vector.load %arg1[%c0_1, %c0_2] : memref<64x128xbf16, #tpu.memory_space<vmem>>, vector<64x128xbf16>
    %cst = arith.constant dense<0.000000e+00> : vector<256x128xf32>
    %2 = tpu.matmul %0, %1, %cst {dimension_numbers = #tpu.dot_dimension_numbers<[1], [0], [0], [1], [0, 0, 1, 1], [], []>} : vector<256x64xbf16>, vector<64x128xbf16>, vector<256x128xf32> -> vector<256x128xf32>
    %c0_3 = arith.constant 0 : index
    %c0_4 = arith.constant 0 : index
    %3 = vector.load %arg3[%c0_3, %c0_4] : memref<256x1xf32, #tpu.memory_space<vmem>>, vector<256x1xf32>
    %4 = vector.broadcast %3 : vector<256x1xf32> to vector<256x128xf32>
    %5 = arith.addf %2, %4 : vector<256x128xf32>
    %6 = arith.negf %5 : vector<256x128xf32>
    %7 = math.exp %6 : vector<256x128xf32>
    %cst_5 = arith.constant 1.000000e+00 : f32
    %8 = vector.broadcast %cst_5 : f32 to vector<256x128xf32>
    %9 = arith.addf %8, %7 : vector<256x128xf32>
    %10 = arith.divf %8, %9 : vector<256x128xf32>
    %11 = arith.mulf %10, %5 : vector<256x128xf32>
    %c0_6 = arith.constant 0 : index
    %c0_7 = arith.constant 0 : index
    %12 = vector.load %arg4[%c0_6, %c0_7] : memref<256x128xf32, #tpu.memory_space<vmem>>, vector<256x128xf32>
    tpu.vector_store %arg4[%c0_6, %c0_7], %11 {strides = array<i32>} : memref<256x128xf32, #tpu.memory_space<vmem>>, vector<256x128xf32>,
    return
  }
  func.func @transform_0(%arg0: i32) -> (i32, i32) {
    %c0_i32 = arith.constant 0 : i32
    %c0_i32_0 = arith.constant 0 : i32
    return %c0_i32, %arg0 : i32, i32
  }
  func.func @transform_1(%arg0: i32) -> (i32, i32) {
    %c0_i32 = arith.constant 0 : i32
    %c0_i32_0 = arith.constant 0 : i32
    %c0_i32_1 = arith.constant 0 : i32
    return %c0_i32, %c0_i32_0 : i32, i32
  }
  func.func @transform_2(%arg0: i32) -> (i32, i32) {
    %c0_i32 = arith.constant 0 : i32
    %c0_i32_0 = arith.constant 0 : i32
    %c0_i32_1 = arith.constant 0 : i32
    return %c0_i32, %c0_i32_0 : i32, i32
  }
  func.func @transform_3(%arg0: i32) -> (i32, i32) {
    %c0_i32 = arith.constant 0 : i32
    %c0_i32_0 = arith.constant 0 : i32
    return %c0_i32, %arg0 : i32, i32
  }
}

</mosaic_0001>

<bundles_post_ra>
// kernel: conv_transpose2d_silu.1
= control target key start
LH: loop header
LB: loop body
LE: loop exit
PB: predicated region body
PF: predicated region fallthrough
CT: control target
= control target key end

     0   :  { %s1630_s12 = smov 0   ;;  %s1632_s13 = smov 0   ;;  %s2121_s0 = inlined_call_operand.vmem [shape: bf16[64,256], index: 0, kind: input, shape index: {}]   ;;  %s2122_s1 = inlined_call_operand.vmem [shape: bf16[256,64], index: 1, kind: input, shape index: {}]   ;;  %s2123_s2 = inlined_call_operand.vmem [shape: f32[256,1], index: 2, kind: input, shape index: {}]   ;;  %s2124_s3 = inlined_call_operand.vmem [shape: f32[256,256], index: 3, kind: output, shape index: {}]  }
   0x1   :  { %s1634_s14 = smov 0  }
   0x2 LB: > { %s1261_s15 = sadd.s32 4294967295, %s1607_s14   ;;  %s1647_s16 = sadd.s32 1, %s1607_s14   ;;  %s1607_s14 = sphi %s1634_s14, %s2128_s14   ;;  %s1603_s13 = sphi %s1632_s13, %s2127_s13   ;;  %s1599_s12 = sphi %s1630_s12, %s2126_s12  }
   0x3   : > { %s17_s17 = ssub.s32 %s1607_s14, %s1647_s16  ;;  %s20_s18 = sadd.s32 1, %s1603_s13 }
   0x4   : > { %p18_p0 = scmp.eq.s32.totalorder %s17_s17, 0  ;;  %p27_p1 = scmp.ne.s32.totalorder %s1603_s13, %s1599_s12 }
   0x5   : > { %p28_p2 = scmp.eq.s32.totalorder %s1607_s14, 0  ;;  %p99_p3 = scmp.eq.s32.totalorder %s1261_s15, 1 }
   0x6   : > { %s1658_s19 = scalar_select %p18_p0, %s1603_s13, %s20_s18  }
   0x7   : > { %p29_p4 = por %p28_p2, %p27_p1  ;;  %p1660_p5 = por %p99_p3, %p27_p1 }
   0x8   : > { %p1264_p6 = scmp.ge.s32.totalorder %s1607_s14, 2 }
   0xa   : > { %127 = sbr.rel (%p1264_p6) target bundleno = 24 (0x18), region = 24 }
   0xf   : > { %130 = sbr.rel (!%p29_p4) target bundleno = 24 (0x18), region = 28  ;;  %s132_s21 = sand.u32 (%p29_p4), 1, %s1603_s13  }
  0x10   : > { %s1266_s22 = sshll.u32 (%p29_p4), %s1607_s14, 2  ;;  %s1265_s23 = sshll.u32 (%p29_p4), %s132_s21, 5 }
  0x11   : > { %s136_s26 = scalar_lea.vmem (%p29_p4), %s2121_s0, %s1266_s22  ;;  %s134_s27 = scalar_lea.vmem (%p29_p4), [#allocation2], %s1265_s23 }
  0x12   : > { %v153_v0 = vld [vmem:[%s136_s26] sm:$0xf] (%p29_p4)  ;;  %v155_v1 = vld [vmem:[%s136_s26 + $0x8] sm:$0xf] (%p29_p4)  ;;  %v157_v2 = vld [vmem:[%s136_s26 + $0x10] sm:$0xf] (%p29_p4) }
  0x13   : > { %154 = vst [vmem:[%s134_s27] sm:$0xf] (%p29_p4), %v153_v0  ;;  %156 = vst [vmem:[%s134_s27 + $0x4] sm:$0xf] (%p29_p4), %v155_v1  ;;  %v159_v3 = vld [vmem:[%s136_s26 + $0x18] sm:$0xf] (%p29_p4) }
  0x14   : > { %v161_v4 = vld [vmem:[%s136_s26 + $0x20] sm:$0xf]  ;;  %158 = vst [vmem:[%s134_s27 + $0x8] sm:$0xf] %v157_v2  ;;  %160 = vst [vmem:[%s134_s27 + $0xc] sm:$0xf] %v159_v3 }
  0x15   : > { %162 = vst [vmem:[%s134_s27 + $0x10] sm:$0xf] %v161_v4  ;;  %v163_v5 = vld [vmem:[%s136_s26 + $0x28] sm:$0xf]  ;;  %v165_v6 = vld [vmem:[%s136_s26 + $0x30] sm:$0xf] }
  0x16   : > { %v167_v7 = vld [vmem:[%s136_s26 + $0x38] sm:$0xf]  ;;  %164 = vst [vmem:[%s134_s27 + $0x14] sm:$0xf] %v163_v5  ;;  %166 = vst [vmem:[%s134_s27 + $0x18] sm:$0xf] %v165_v6 }
  0x17   : > { %168 = vst [vmem:[%s134_s27 + $0x1c] sm:$0xf] %v167_v7 }
  0x18 PF: > { %p1267_p7 = scmp.ge.s32.totalorder %s1607_s14, 1  ;;  %p207_p8 = scmp.lt.s32.totalorder %s1607_s14, 3 }
  0x1a   : > { %p208_p9 = pnand %p1267_p7, %p207_p8 }
  0x1b   : > { %s214_s5 = sand.u32 (!%p208_p9), 1, %s1599_s12  }
  0x1c   : > { %211 = sbr.rel (%p208_p9) target bundleno = 337 (0x151), region = 69  ;;  %s1268_s6 = sshll.u32 (!%p208_p9), %s214_s5, 5 }
  0x1d   : > { %s216_s11 = scalar_lea.vmem (!%p208_p9), [#allocation2], %s1268_s6  ;;  %s1914_s4 = sshll.u32 (!%p208_p9), %s214_s5, 8 }
  0x1e   : > { %s1941_s12 = scalar_lea.vmem (!%p208_p9), [#allocation3], %s1914_s4 }
  0x21   : > { %v279_v8 = vld [vmem:[%s2123_s2 + $0x10] sm:$0xff]  ;;  %v277_v9 = vld [vmem:[%s2123_s2] sm:$0xff]  ;;  %v1609_v10 = vmov 0   ;;  %v280_v11 = vld [vmem:[%s2123_s2 + $0x18] sm:$0xff]  ;;  %vm573_vm0 = vcmask 523264   ;;  %s1339_s5 = sshll.u32 (%p1660_p5), %s1261_s15, 3 }
  0x22   : > { %1436 = vset.pattern.permute.xlu1 %v1609_v10  ;;  %1435 = vset.pattern.permute.xlu0 %v1609_v10  ;;  %v278_v12 = vld [vmem:[%s2123_s2 + $0x8] sm:$0xff]  ;;  %v1437_v13 = vld [vmem:[%s216_s11 + $0x18] sm:$0xff]   ;;  %v1438_v14 = vld [vmem:[%s216_s11 + $0x10] sm:$0xff]   ;;  %s2048_s20 = scalar_lea.vmem (%p1660_p5), %s2124_s3, %s1339_s5 }
  0x23   : > { %321 = vperm.xlu1 %1436, %v279_v8   ;;  %311 = vperm.xlu0 %1435, %v277_v9   ;;  %v282_v15 = vld [vmem:[%s2123_s2 + $0x28] sm:$0xff]  ;;  %v281_v16 = vld [vmem:[%s2123_s2 + $0x20] sm:$0xff]  ;;  %v284_v20 = vld [vmem:[%s2123_s2 + $0x38] sm:$0xff] }
  0x24   : > { %1362 = vmatprep.subr.bf16.mxu0 %v1437_v13  ;;  %1402 = vmatprep.subr.bf16.mxu1 %v1437_v13  ;;  %v1439_v17 = vld [vmem:[%s216_s11 + $0x8] sm:$0xff]   ;;  %v1441_v18 = vld [vmem:[%s2122_s1] sm:$0xff]   ;;  %v283_v21 = vld [vmem:[%s2123_s2 + $0x30] sm:$0xff] }
  0x25   : > { %1363 = vmatpush3.bf16.msra.mxu0 %v1437_v13  ;;  %1406 = vmatpush3.bf16.msra.mxu1 %v1437_v13  ;;  %v1442_v19 = vld [vmem:[%s2122_s1 + $0x40] sm:$0xff]   ;;  %v286_v23 = vld [vmem:[%s2123_s2 + $0x48] sm:$0xff]  ;;  %v288_v25 = vld [vmem:[%s2123_s2 + $0x58] sm:$0xff] }
  0x26   : > { %1364 = vmatprep.subr.bf16.mxu0 %v1438_v14  ;;  %1403 = vmatprep.subr.bf16.mxu1 %v1438_v14  ;;  %v1440_v22 = vld [vmem:[%s216_s11] sm:$0xff]   ;;  %v287_v26 = vld [vmem:[%s2123_s2 + $0x50] sm:$0xff]  ;;  %v1443_v27 = vld [vmem:[%s2122_s1 + $0x8] sm:$0xff]  }
  0x27   : > { %326 = vperm.xlu1 %1436, %v280_v11   ;;  %316 = vperm.xlu0 %1435, %v278_v12   ;;  %v285_v24 = vld [vmem:[%s2123_s2 + $0x40] sm:$0xff]  ;;  %v1444_v28 = vld [vmem:[%s2122_s1 + $0x48] sm:$0xff]   ;;  %v1445_v29 = vld [vmem:[%s2122_s1 + $0x10] sm:$0xff]  }
  0x28   : > { %1370 = vmatprep.mubr.msk.bf16.mxu0 %vm573_vm0, %v1441_v18  ;;  %1386 = vmatprep.mubr.msk.bf16.mxu1 %vm573_vm0, %v1442_v19  ;;  %v1446_v30 = vld [vmem:[%s2122_s1 + $0x50] sm:$0xff]   ;;  %v290_v31 = vld [vmem:[%s2123_s2 + $0x68] sm:$0xff]  ;;  %v289_v32 = vld [vmem:[%s2123_s2 + $0x60] sm:$0xff] }
  0x29   : > { %1365 = vmatpush3.bf16.msra.mxu0 %v1438_v14  ;;  %1407 = vmatpush3.bf16.msra.mxu1 %v1438_v14  ;;  %v292_v33 = vld [vmem:[%s2123_s2 + $0x78] sm:$0xff]  ;;  %v291_v34 = vld [vmem:[%s2123_s2 + $0x70] sm:$0xff]  ;;  %v1449_v37 = vld [vmem:[%s2122_s1 + $0x20] sm:$0xff]  }
  0x2a   : > { %1366 = vmatprep.subr.bf16.mxu0 %v1439_v17  ;;  %1404 = vmatprep.subr.bf16.mxu1 %v1439_v17  ;;  %v1447_v35 = vld [vmem:[%s2122_s1 + $0x18] sm:$0xff]   ;;  %v1450_v38 = vld [vmem:[%s2122_s1 + $0x60] sm:$0xff]   ;;  %v294_v39 = vld [vmem:[%s2123_s2 + $0x88] sm:$0xff] }
  0x2b   : > { %336 = vperm.xlu1 %1436, %v282_v15   ;;  %331 = vperm.xlu0 %1435, %v281_v16   ;;  %v1448_v36 = vld [vmem:[%s2122_s1 + $0x58] sm:$0xff]   ;;  %v293_v40 = vld [vmem:[%s2123_s2 + $0x80] sm:$0xff]  ;;  %v295_v42 = vld [vmem:[%s2123_s2 + $0x90] sm:$0xff] }
  0x2c   : > { %v296_v41 = vld [vmem:[%s2123_s2 + $0x98] sm:$0xff]  ;;  %v1451_v43 = vld [vmem:[%s2122_s1 + $0x28] sm:$0xff]   ;;  %v1453_v45 = vld [vmem:[%s2122_s1 + $0x30] sm:$0xff]  }
  0x2d   : > { %1367 = vmatpush3.bf16.msra.mxu0 %v1439_v17  ;;  %1408 = vmatpush3.bf16.msra.mxu1 %v1439_v17  ;;  %v1452_v44 = vld [vmem:[%s2122_s1 + $0x68] sm:$0xff]   ;;  %v1454_v46 = vld [vmem:[%s2122_s1 + $0x70] sm:$0xff]   ;;  %v297_v48 = vld [vmem:[%s2123_s2 + $0xa0] sm:$0xff] }
  0x2e   : > { %1368 = vmatprep.subr.bf16.mxu0 %v1440_v22  ;;  %1405 = vmatprep.subr.bf16.mxu1 %v1440_v22  ;;  %v298_v47 = vld [vmem:[%s2123_s2 + $0xa8] sm:$0xff]  ;;  %v300_v49 = vld [vmem:[%s2123_s2 + $0xb8] sm:$0xff]  ;;  %v299_v50 = vld [vmem:[%s2123_s2 + $0xb0] sm:$0xff] }
  0x2f   : > { %346 = vperm.xlu1 %1436, %v284_v20   ;;  %341 = vperm.xlu0 %1435, %v283_v21   ;;  %v1455_v51 = vld [vmem:[%s2122_s1 + $0x38] sm:$0xff]   ;;  %v302_v53 = vld [vmem:[%s2123_s2 + $0xc8] sm:$0xff]  ;;  %v301_v54 = vld [vmem:[%s2123_s2 + $0xc0] sm:$0xff] }
  0x30   : > { %v1456_v52 = vld [vmem:[%s2122_s1 + $0x78] sm:$0xff]   ;;  %v303_v56 = vld [vmem:[%s2123_s2 + $0xd0] sm:$0xff]  ;;  %v306_v57 = vld [vmem:[%s2123_s2 + $0xe8] sm:$0xff] }
  0x31   : > { %1369 = vmatpush3.bf16.msra.mxu0 %v1440_v22  ;;  %1409 = vmatpush3.bf16.msra.mxu1 %v1440_v22  ;;  %v304_v55 = vld [vmem:[%s2123_s2 + $0xd8] sm:$0xff]  ;;  %v305_v58 = vld [vmem:[%s2123_s2 + $0xe0] sm:$0xff]  ;;  %v307_v60 = vld [vmem:[%s2123_s2 + $0xf0] sm:$0xff] }
  0x32   : > { %v308_v59 = vld [vmem:[%s2123_s2 + $0xf8] sm:$0xff] }
  0x33   : > { %356 = vperm.xlu1 %1436, %v286_v23   ;;  %351 = vperm.xlu0 %1435, %v285_v24  }
  0x34   : > { %1371 = vmatmul.mubr.msk.bf16.vlgmr.msra.gmra.mxu0 %vm573_vm0, %v1443_v27  ;;  %1387 = vmatmul.mubr.msk.bf16.vlgmr.msra.gmra.mxu1 %vm573_vm0, %v1444_v28 }
  0x35   : > { %1374 = vmatprep.mubr.msk.bf16.mxu0 %vm573_vm0, %v1445_v29  ;;  %1390 = vmatprep.mubr.msk.bf16.mxu1 %vm573_vm0, %v1446_v30 }
  0x37   : > { %366 = vperm.xlu1 %1436, %v288_v25   ;;  %361 = vperm.xlu0 %1435, %v287_v26  }
  0x3b   : > { %376 = vperm.xlu1 %1436, %v290_v31   ;;  %371 = vperm.xlu0 %1435, %v289_v32  }
  0x3c   : > { %1375 = vmatmul.mubr.msk.bf16.gmra.mxu0 %vm573_vm0, %v1447_v35  ;;  %1391 = vmatmul.mubr.msk.bf16.gmra.mxu1 %vm573_vm0, %v1448_v36 }
  0x3d   : > { %1378 = vmatprep.mubr.msk.bf16.mxu0 %vm573_vm0, %v1449_v37  ;;  %1394 = vmatprep.mubr.msk.bf16.mxu1 %vm573_vm0, %v1450_v38 }
  0x3f   : > { %386 = vperm.xlu1 %1436, %v292_v33   ;;  %381 = vperm.xlu0 %1435, %v291_v34  }
  0x43   : > { %396 = vperm.xlu1 %1436, %v294_v39   ;;  %391 = vperm.xlu0 %1435, %v293_v40  }
  0x44   : > { %1379 = vmatmul.mubr.msk.bf16.gmra.mxu0 %vm573_vm0, %v1451_v43  ;;  %1395 = vmatmul.mubr.msk.bf16.gmra.mxu1 %vm573_vm0, %v1452_v44 }
  0x45   : > { %1382 = vmatprep.mubr.msk.bf16.mxu0 %vm573_vm0, %v1453_v45  ;;  %1398 = vmatprep.mubr.msk.bf16.mxu1 %vm573_vm0, %v1454_v46 }
  0x47   : > { %406 = vperm.xlu1 %1436, %v296_v41   ;;  %401 = vperm.xlu0 %1435, %v295_v42  }
  0x4b   : > { %416 = vperm.xlu1 %1436, %v298_v47   ;;  %411 = vperm.xlu0 %1435, %v297_v48  }
  0x4c   : > { %1383 = vmatmul.mubr.msk.bf16.gmra.mxu0 %vm573_vm0, %v1455_v51  ;;  %1399 = vmatmul.mubr.msk.bf16.gmra.mxu1 %vm573_vm0, %v1456_v52 }
  0x4f   : > { %426 = vperm.xlu1 %1436, %v300_v49   ;;  %421 = vperm.xlu0 %1435, %v299_v50  }
  0x53   : > { %436 = vperm.xlu1 %1436, %v302_v53   ;;  %431 = vperm.xlu0 %1435, %v301_v54  }
  0x57   : > { %446 = vperm.xlu1 %1436, %v304_v55   ;;  %441 = vperm.xlu0 %1435, %v303_v56  }
  0x5b   : > { %456 = vperm.xlu1 %1436, %v306_v57   ;;  %451 = vperm.xlu0 %1435, %v305_v58  }
  0x5f   : > { %466 = vperm.xlu1 %1436, %v308_v59   ;;  %461 = vperm.xlu0 %1435, %v307_v60  }
  0x9e   : > { %v312_v61 = vpop.permute.xlu0 %311  ;;  %v322_v62 = vpop.permute.xlu1 %321 }
  0xa2   : > { %v317_v63 = vpop.permute.xlu0 %316  ;;  %v327_v0 = vpop.permute.xlu1 %326 }
  0xa6   : > { %v332_v1 = vpop.permute.xlu0 %331  ;;  %v1835_v2 = vpop.permute.xlu1 %336 }
  0xaa   : > { %v342_v3 = vpop.permute.xlu0 %341  ;;  %v1837_v4 = vpop.permute.xlu1 %346 }
  0xae   : > { %v1839_v5 = vpop.permute.xlu0 %351  ;;  %v1841_v6 = vpop.permute.xlu1 %356 }
  0xb2   : > { %v1843_v7 = vpop.permute.xlu0 %361  ;;  %v1845_v8 = vpop.permute.xlu1 %366 }
  0xb6   : > { %v1847_v9 = vpop.permute.xlu0 %371  ;;  %v1849_v10 = vpop.permute.xlu1 %376 }
  0xba   : > { %v1851_v11 = vpop.permute.xlu0 %381  ;;  %v1853_v12 = vpop.permute.xlu1 %386 }
  0xbe   : > { %v392_v13 = vpop.permute.xlu0 %391  ;;  %v397_v14 = vpop.permute.xlu1 %396 }
  0xc2   : > { %v402_v15 = vpop.permute.xlu0 %401  ;;  %v407_v18 = vpop.permute.xlu1 %406 }
  0xc6   : > { %v412_v23 = vpop.permute.xlu0 %411  ;;  %v417_v36 = vpop.permute.xlu1 %416 }
  0xca   : > { %v422_v43 = vpop.permute.xlu0 %421  ;;  %v427_v56 = vpop.permute.xlu1 %426 }
  0xf4   : > { %v1372_v16 = vpop.f32.mrf.mxu0  ;;  %v1388_v17 = vpop.f32.mrf.mxu1 }
  0xf5   : > { %v1855_v19 = vadd.f32 %v1372_v16, %v322_v62  ;;  %v1857_v20 = vadd.f32 %v1388_v17, %v402_v15 }
  0xf6   : > { %v656_v21 = vpop.f32.mrf.mxu0  ;;  %v720_v22 = vpop.f32.mrf.mxu1 }
  0xf7   : > { %v1308_v24 = vmul.f32 -1.442695, %v1855_v19  ;;  %v1324_v25 = vmul.f32 -1.442695, %v1857_v20  ;;  %v1861_v26 = vadd.f32 %v656_v21, %v312_v61  ;;  %v1863_v27 = vadd.f32 %v720_v22, %v392_v13  ;;  %v432_v22 = vpop.permute.xlu0 %431 }
  0xf8   : > { %v1373_v28 = vpop.f32.mrf.mxu0  ;;  %v1389_v29 = vpop.f32.mrf.mxu1 }
  0xf9   : > { %1457 = vpow2.f32 %v1308_v24  ;;  %v1306_v30 = vmul.f32 -1.442695, %v1861_v26  ;;  %v1322_v31 = vmul.f32 -1.442695, %v1863_v27  ;;  %v1867_v32 = vadd.f32 %v1373_v28, %v327_v0 }
  0xfa   : > { %1459 = vpow2.f32 %v1324_v25  ;;  %v1869_v33 = vadd.f32 %v1389_v29, %v407_v18  ;;  %v659_v34 = vpop.f32.mrf.mxu0  ;;  %v723_v35 = vpop.f32.mrf.mxu1 }
  0xfb   : > { %1461 = vpow2.f32 %v1306_v30  ;;  %v1309_v37 = vmul.f32 -1.442695, %v1867_v32  ;;  %v1872_v38 = vadd.f32 %v659_v34, %v317_v63  ;;  %v1874_v39 = vadd.f32 %v723_v35, %v397_v14 }
  0xfc   : > { %1463 = vpow2.f32 %v1322_v31  ;;  %v1325_v40 = vmul.f32 -1.442695, %v1869_v33  ;;  %v1376_v41 = vpop.f32.mrf.mxu0  ;;  %v1392_v42 = vpop.f32.mrf.mxu1 }
  0xfd   : > { %1465 = vpow2.f32 %v1309_v37  ;;  %v1307_v44 = vmul.f32 -1.442695, %v1872_v38  ;;  %v1323_v45 = vmul.f32 -1.442695, %v1874_v39  ;;  %v1879_v46 = vadd.f32 %v1376_v41, %v342_v3 }
  0xfe   : > { %1467 = vpow2.f32 %v1325_v40  ;;  %v1881_v47 = vadd.f32 %v1392_v42, %v422_v43  ;;  %v672_v48 = vpop.f32.mrf.mxu0  ;;  %v736_v49 = vpop.f32.mrf.mxu1 }
  0xff   : > { %1469 = vpow2.f32 %v1307_v44  ;;  %v1312_v50 = vmul.f32 -1.442695, %v1879_v46  ;;  %v1884_v51 = vadd.f32 %v672_v48, %v332_v1  ;;  %v1886_v52 = vadd.f32 %v736_v49, %v412_v23  ;;  %v442_v44 = vpop.permute.xlu0 %441 }
 0x100   : > { %1471 = vpow2.f32 %v1323_v45  ;;  %v1328_v53 = vmul.f32 -1.442695, %v1881_v47  ;;  %v1377_v54 = vpop.f32.mrf.mxu0  ;;  %v1393_v55 = vpop.f32.mrf.mxu1 }
 0x101   : > { %1473 = vpow2.f32 %v1312_v50  ;;  %v1310_v57 = vmul.f32 -1.442695, %v1884_v51  ;;  %v1326_v58 = vmul.f32 -1.442695, %v1886_v52  ;;  %v1892_v59 = vadd.f32 %v1377_v54, %v1837_v4 }
 0x102   : > { %1475 = vpow2.f32 %v1328_v53  ;;  %v1894_v60 = vadd.f32 %v1393_v55, %v427_v56  ;;  %v675_v61 = vpop.f32.mrf.mxu0  ;;  %v739_v62 = vpop.f32.mrf.mxu1 }
 0x103   : > { %1477 = vpow2.f32 %v1310_v57  ;;  %v1313_v63 = vmul.f32 -1.442695, %v1892_v59  ;;  %v1898_v0 = vadd.f32 %v675_v61, %v1835_v2  ;;  %v1900_v1 = vadd.f32 %v739_v62, %v417_v36  ;;  %v1905_v36 = vpop.permute.xlu1 %436 }
 0x104   : > { %1479 = vpow2.f32 %v1326_v58  ;;  %v1329_v3 = vmul.f32 -1.442695, %v1894_v60  ;;  %v1380_v13 = vpop.f32.mrf.mxu0  ;;  %v1396_v14 = vpop.f32.mrf.mxu1 }
 0x105   : > { %1481 = vpow2.f32 %v1313_v63  ;;  %v1311_v4 = vmul.f32 -1.442695, %v1898_v0  ;;  %v1327_v15 = vmul.f32 -1.442695, %v1900_v1  ;;  %v1908_v63 = vadd.f32 %v1380_v13, %v1843_v7 }
 0x106   : > { %v1458_v16 = vpop.eup %1457  ;;  %1483 = vpow2.f32 %v1329_v3  ;;  %v688_v17 = vpop.f32.mrf.mxu0 }
 0x107   : > { %v752_v18 = vpop.f32.mrf.mxu1  ;;  %v1460_v21 = vpop.eup %1459  ;;  %v881_v2 = vadd.f32 1.0, %v1458_v16  ;;  %1485 = vpow2.f32 %v1311_v4  ;;  %v1910_v16 = vadd.f32 %v1396_v14, %v442_v44 }
 0x108   : > { %v1462_v23 = vpop.eup %1461  ;;  %v897_v24 = vadd.f32 1.0, %v1460_v21  ;;  %1487 = vpow2.f32 %v1327_v15  ;;  %v1381_v25 = vpop.f32.mrf.mxu0  ;;  %v1919_v13 = vadd.f32 %v752_v18, %v432_v22 }
 0x109   : > { %v1464_v28 = vpop.eup %1463  ;;  %1489 = vrcp.f32 %v881_v2  ;;  %v879_v29 = vadd.f32 1.0, %v1462_v23  ;;  %v1397_v30 = vpop.f32.mrf.mxu1 }
 0x10a   : > { %v1466_v31 = vpop.eup %1465  ;;  %1491 = vrcp.f32 %v897_v24  ;;  %v895_v34 = vadd.f32 1.0, %v1464_v28  ;;  %v691_v42 = vpop.f32.mrf.mxu0  ;;  %v1917_v24 = vadd.f32 %v688_v17, %v1839_v5  ;;  %v1332_v5 = vmul.f32 -1.442695, %v1910_v16 }
 0x10b   : > { %v1468_v35 = vpop.eup %1467  ;;  %1493 = vrcp.f32 %v879_v29  ;;  %v882_v37 = vadd.f32 1.0, %v1466_v31  ;;  %v755_v48 = vpop.f32.mrf.mxu1 }
 0x10c   : > { %v1470_v40 = vpop.eup %1469  ;;  %1495 = vrcp.f32 %v895_v34  ;;  %v898_v41 = vadd.f32 1.0, %v1468_v35  ;;  %v1384_v57 = vpop.f32.mrf.mxu0  ;;  %v1316_v34 = vmul.f32 -1.442695, %v1908_v63  ;;  %v1923_v35 = vadd.f32 %v1381_v25, %v1845_v8 }
 0x10d   : > { %v1472_v43 = vpop.eup %1471  ;;  %1497 = vrcp.f32 %v882_v37  ;;  %v880_v45 = vadd.f32 1.0, %v1470_v40  ;;  %v447_v61 = vpop.permute.xlu1 %446  ;;  %v1314_v44 = vmul.f32 -1.442695, %v1917_v24  ;;  %v1933_v8 = vadd.f32 %v691_v42, %v1841_v6 }
 0x10e   : > { %v1474_v49 = vpop.eup %1473  ;;  %1499 = vrcp.f32 %v898_v41  ;;  %v896_v50 = vadd.f32 1.0, %v1472_v43  ;;  %v1400_v3 = vpop.f32.mrf.mxu1  ;;  %v1926_v17 = vadd.f32 %v1397_v30, %v447_v61  ;;  %v1938_v30 = vadd.f32 %v755_v48, %v1905_v36 }
 0x10f   : > { %v1476_v53 = vpop.eup %1475  ;;  %1501 = vrcp.f32 %v880_v45  ;;  %v885_v54 = vadd.f32 1.0, %v1474_v49  ;;  %v452_v2 = vpop.permute.xlu0 %451  ;;  %v1330_v49 = vmul.f32 -1.442695, %v1919_v13  ;;  %v1315_v61 = vmul.f32 -1.442695, %v1933_v8 }
 0x110   : > { %v1478_v55 = vpop.eup %1477  ;;  %1503 = vrcp.f32 %v896_v50  ;;  %v901_v56 = vadd.f32 1.0, %v1476_v53  ;;  %v704_v29 = vpop.f32.mrf.mxu0 }
 0x111   : > { %v1480_v58 = vpop.eup %1479  ;;  %1505 = vrcp.f32 %v885_v54  ;;  %v883_v62 = vadd.f32 1.0, %v1478_v55  ;;  %v768_v37 = vpop.f32.mrf.mxu1  ;;  %v1333_v55 = vmul.f32 -1.442695, %v1926_v17 }
 0x112   : > { %v1482_v4 = vpop.eup %1481  ;;  %1507 = vrcp.f32 %v901_v56  ;;  %v899_v15 = vadd.f32 1.0, %v1480_v58  ;;  %v1928_v22 = vpop.permute.xlu1 %456 }
 0x113   : > { %v1484_v21 = vpop.eup %1483  ;;  %1509 = vrcp.f32 %v883_v62  ;;  %v886_v23 = vadd.f32 1.0, %v1482_v4  ;;  %v1385_v50 = vpop.f32.mrf.mxu0  ;;  %v1331_v62 = vmul.f32 -1.442695, %v1938_v30 }
 0x114   : > { %v1486_v28 = vpop.eup %1485  ;;  %1511 = vrcp.f32 %v899_v15  ;;  %v902_v7 = vadd.f32 1.0, %v1484_v21  ;;  %v462_v54 = vpop.permute.xlu0 %461 }
 0x115   : > { %v1488_v31 = vpop.eup %1487  ;;  %1513 = vrcp.f32 %v886_v23  ;;  %v884_v14 = vadd.f32 1.0, %v1486_v28  ;;  %v1401_v36 = vpop.f32.mrf.mxu1  ;;  %v1952_v56 = vadd.f32 %v1400_v3, %v462_v54  ;;  %v1963_v3 = vadd.f32 %v768_v37, %v452_v2 }
 0x116   : > { %v1490_v40 = vpop.eup %1489  ;;  %1515 = vrcp.f32 %v902_v7  ;;  %v900_v41 = vadd.f32 1.0, %v1488_v31  ;;  %v707_v4 = vpop.f32.mrf.mxu0  ;;  %v1969_v23 = vadd.f32 %v1385_v50, %v1853_v12 }
 0x117   : > { %v1492_v18 = vpop.eup %1491  ;;  %v977_v43 = vmul.f32 %v1490_v40, %v1855_v19  ;;  %1517 = vrcp.f32 %v884_v14  ;;  %v1317_v19 = vmul.f32 -1.442695, %v1923_v35  ;;  %v1336_v7 = vmul.f32 -1.442695, %v1952_v56 }
 0x118   : > { %v1494_v25 = vpop.eup %1493  ;;  %v993_v45 = vmul.f32 %v1492_v18, %v1857_v20  ;;  %1519 = vrcp.f32 %v900_v41  ;;  %v1947_v20 = vadd.f32 %v1384_v57, %v1851_v11  ;;  %v1958_v11 = vadd.f32 %v704_v29, %v1847_v9 }
 0x119   : > { %v1496_v53 = vpop.eup %1495  ;;  %1009 = vst [vmem:[%s1941_s12 + $0x10] sm:$0xff] %v977_v43  ;;  %v975_v6 = vmul.f32 %v1494_v25, %v1861_v26  ;;  %1521 = vpow2.f32 %v1316_v34  ;;  %v1980_v14 = vadd.f32 %v707_v4, %v1849_v10  ;;  %v1334_v37 = vmul.f32 -1.442695, %v1963_v3 }
 0x11a   : > { %v1498_v42 = vpop.eup %1497  ;;  %1025 = vst [vmem:[%s1941_s12 + $0x90] sm:$0xff] %v993_v45  ;;  %v991_v48 = vmul.f32 %v1496_v53, %v1863_v27  ;;  %1523 = vpow2.f32 %v1332_v5  ;;  %v1320_v9 = vmul.f32 -1.442695, %v1947_v20  ;;  %v1318_v12 = vmul.f32 -1.442695, %v1958_v11 }
 0x11b   : > { %v1500_v58 = vpop.eup %1499  ;;  %1007 = vst [vmem:[%s1941_s12] sm:$0xff] %v975_v6  ;;  %v978_v26 = vmul.f32 %v1498_v42, %v1867_v32  ;;  %1525 = vpow2.f32 %v1314_v44  ;;  %v467_v32 = vpop.permute.xlu1 %466  ;;  %v1321_v10 = vmul.f32 -1.442695, %v1969_v23 }
 0x11c   : > { %v1502_v57 = vpop.eup %1501  ;;  %1023 = vst [vmem:[%s1941_s12 + $0x80] sm:$0xff] %v991_v48  ;;  %v994_v27 = vmul.f32 %v1500_v58, %v1869_v33  ;;  %1527 = vpow2.f32 %v1330_v49  ;;  %v771_v33 = vpop.f32.mrf.mxu1  ;;  %v1974_v29 = vadd.f32 %v1401_v36, %v467_v32 }
 0x11d   : > { %v1504_v15 = vpop.eup %1503  ;;  %1010 = vst [vmem:[%s1941_s12 + $0x18] sm:$0xff] %v978_v26  ;;  %v976_v21 = vmul.f32 %v1502_v57, %v1872_v38  ;;  %1529 = vpow2.f32 %v1317_v19  ;;  %v1986_v40 = vadd.f32 %v771_v33, %v1928_v22 }
 0x11e   : > { %v1506_v28 = vpop.eup %1505  ;;  %1026 = vst [vmem:[%s1941_s12 + $0x98] sm:$0xff] %v994_v27  ;;  %v992_v2 = vmul.f32 %v1504_v15, %v1874_v39  ;;  %1531 = vpow2.f32 %v1333_v55 }
 0x11f   : > { %v1508_v31 = vpop.eup %1507  ;;  %1008 = vst [vmem:[%s1941_s12 + $0x8] sm:$0xff] %v976_v21  ;;  %v981_v38 = vmul.f32 %v1506_v28, %v1879_v46  ;;  %1533 = vpow2.f32 %v1315_v61 }
 0x120   : > { %v1510_v34 = vpop.eup %1509  ;;  %1024 = vst [vmem:[%s1941_s12 + $0x88] sm:$0xff] %v992_v2  ;;  %v997_v39 = vmul.f32 %v1508_v31, %v1881_v47  ;;  %1535 = vpow2.f32 %v1331_v62  ;;  %v1337_v47 = vmul.f32 -1.442695, %v1974_v29 }
 0x121   : > { %v1512_v41 = vpop.eup %1511  ;;  %1013 = vst [vmem:[%s1941_s12 + $0x30] sm:$0xff] %v981_v38  ;;  %v979_v46 = vmul.f32 %v1510_v34, %v1884_v51  ;;  %1537 = vpow2.f32 %v1320_v9  ;;  %v1319_v51 = vmul.f32 -1.442695, %v1980_v14 }
 0x122   : > { %v1514_v5 = vpop.eup %1513  ;;  %1029 = vst [vmem:[%s1941_s12 + $0xb0] sm:$0xff] %v997_v39  ;;  %v995_v18 = vmul.f32 %v1512_v41, %v1886_v52  ;;  %1539 = vpow2.f32 %v1336_v7  ;;  %v1335_v52 = vmul.f32 -1.442695, %v1986_v40 }
 0x123   : > { %v1516_v43 = vpop.eup %1515  ;;  %1011 = vst [vmem:[%s1941_s12 + $0x20] sm:$0xff] %v979_v46  ;;  %v982_v22 = vmul.f32 %v1514_v5, %v1892_v59  ;;  %1541 = vpow2.f32 %v1318_v12 }
 0x124   : > { %v1518_v44 = vpop.eup %1517  ;;  %1027 = vst [vmem:[%s1941_s12 + $0xa0] sm:$0xff] %v995_v18  ;;  %v998_v25 = vmul.f32 %v1516_v43, %v1894_v60  ;;  %1543 = vpow2.f32 %v1334_v37 }
 0x125   : > { %v1520_v45 = vpop.eup %1519  ;;  %1014 = vst [vmem:[%s1941_s12 + $0x38] sm:$0xff] %v982_v22  ;;  %v980_v49 = vmul.f32 %v1518_v44, %v1898_v0  ;;  %1545 = vpow2.f32 %v1321_v10 }
 0x126   : > { %v1522_v50 = vpop.eup %1521  ;;  %1030 = vst [vmem:[%s1941_s12 + $0xb8] sm:$0xff] %v998_v25  ;;  %v996_v59 = vmul.f32 %v1520_v45, %v1900_v1  ;;  %1547 = vpow2.f32 %v1337_v47 }
 0x127   : > { %v1524_v53 = vpop.eup %1523  ;;  %1012 = vst [vmem:[%s1941_s12 + $0x28] sm:$0xff] %v980_v49  ;;  %v889_v54 = vadd.f32 1.0, %v1522_v50  ;;  %1549 = vpow2.f32 %v1319_v51 }
 0x128   : > { %v1526_v6 = vpop.eup %1525  ;;  %1028 = vst [vmem:[%s1941_s12 + $0xa8] sm:$0xff] %v996_v59  ;;  %v905_v60 = vadd.f32 1.0, %v1524_v53  ;;  %1551 = vpow2.f32 %v1335_v52 }
 0x129   : > { %v1528_v19 = vpop.eup %1527  ;;  %1553 = vrcp.f32 %v889_v54  ;;  %v887_v36 = vadd.f32 1.0, %v1526_v6 }
 0x12a   : > { %v1530_v42 = vpop.eup %1529  ;;  %1555 = vrcp.f32 %v905_v60  ;;  %v903_v0 = vadd.f32 1.0, %v1528_v19 }
 0x12b   : > { %v1532_v48 = vpop.eup %1531  ;;  %1557 = vrcp.f32 %v887_v36  ;;  %v890_v55 = vadd.f32 1.0, %v1530_v42  ;;  %v1150_v36 = vld [vmem:[%s1941_s12 + $0x30] sm:$0xff] (%p1660_p5) }
 0x12c   : > { %v1534_v58 = vpop.eup %1533  ;;  %1559 = vrcp.f32 %v903_v0  ;;  %v906_v1 = vadd.f32 1.0, %v1532_v48  ;;  %v1152_v42 = vld [vmem:[%s1941_s12 + $0x38] sm:$0xff] (%p1660_p5)  ;;  %1151 = vst [vmem:[%s2048_s20 + $0x60] sm:$0xff] (%p1660_p5), %v1150_v36 }
 0x12d   : > { %v1536_v26 = vpop.eup %1535  ;;  %1561 = vrcp.f32 %v890_v55  ;;  %v888_v61 = vadd.f32 1.0, %v1534_v58  ;;  %1153 = vst [vmem:[%s2048_s20 + $0x70] sm:$0xff] (%p1660_p5), %v1152_v42 }
 0x12e   : > { %v1538_v57 = vpop.eup %1537  ;;  %1563 = vrcp.f32 %v906_v1  ;;  %v904_v27 = vadd.f32 1.0, %v1536_v26  ;;  %v1148_v19 = vld [vmem:[%s1941_s12 + $0x28] sm:$0xff] (%p1660_p5) }
 0x12f   : > { %v1540_v62 = vpop.eup %1539  ;;  %1565 = vrcp.f32 %v888_v61  ;;  %v893_v4 = vadd.f32 1.0, %v1538_v57  ;;  %1149 = vst [vmem:[%s2048_s20 + $0x50] sm:$0xff] (%p1660_p5), %v1148_v19 }
 0x130   : > { %v1542_v15 = vpop.eup %1541  ;;  %1567 = vrcp.f32 %v904_v27  ;;  %v909_v32 = vadd.f32 1.0, %v1540_v62  ;;  %v1170_v27 = vld [vmem:[%s1941_s12 + $0x80] sm:$0xff] (%p1660_p5)  ;;  %v1172_v62 = vld [vmem:[%s1941_s12 + $0x88] sm:$0xff] (%p1660_p5) }
 0x131   : > { %v1544_v21 = vpop.eup %1543  ;;  %1569 = vrcp.f32 %v893_v4  ;;  %v891_v9 = vadd.f32 1.0, %v1542_v15  ;;  %1171 = vst [vmem:[%s2048_s20 + $0x100] sm:$0xff] (%p1660_p5), %v1170_v27  ;;  %1173 = vst [vmem:[%s2048_s20 + $0x110] sm:$0xff] (%p1660_p5), %v1172_v62  ;;  %v1174_v4 = vld [vmem:[%s1941_s12 + $0x90] sm:$0xff] (%p1660_p5)  ;;  %v1176_v15 = vld [vmem:[%s1941_s12 + $0x98] sm:$0xff] (%p1660_p5) }
 0x132   : > { %v1546_v33 = vpop.eup %1545  ;;  %1571 = vrcp.f32 %v909_v32  ;;  %v907_v28 = vadd.f32 1.0, %v1544_v21  ;;  %v1178_v32 = vld [vmem:[%s1941_s12 + $0xa0] sm:$0xff] (%p1660_p5)  ;;  %1175 = vst [vmem:[%s2048_s20 + $0x120] sm:$0xff] (%p1660_p5), %v1174_v4  ;;  %1177 = vst [vmem:[%s2048_s20 + $0x130] sm:$0xff] (%p1660_p5), %v1176_v15  ;;  %v1180_v21 = vld [vmem:[%s1941_s12 + $0xa8] sm:$0xff] (%p1660_p5) }
 0x133   : > { %v1548_v2 = vpop.eup %1547  ;;  %1573 = vrcp.f32 %v891_v9  ;;  %v894_v7 = vadd.f32 1.0, %v1546_v33  ;;  %1179 = vst [vmem:[%s2048_s20 + $0x140] sm:$0xff] (%p1660_p5), %v1178_v32  ;;  %v1182_v9 = vld [vmem:[%s1941_s12 + $0xb0] sm:$0xff] (%p1660_p5)  ;;  %v1184_v33 = vld [vmem:[%s1941_s12 + $0xb8] sm:$0xff] (%p1660_p5)  ;;  %1181 = vst [vmem:[%s2048_s20 + $0x150] sm:$0xff] (%p1660_p5), %v1180_v21 }
 0x134   : > { %v1550_v31 = vpop.eup %1549  ;;  %1575 = vrcp.f32 %v907_v28  ;;  %v910_v38 = vadd.f32 1.0, %v1548_v2  ;;  %1183 = vst [vmem:[%s2048_s20 + $0x160] sm:$0xff] (%p1660_p5), %v1182_v9  ;;  %1185 = vst [vmem:[%s2048_s20 + $0x170] sm:$0xff] (%p1660_p5), %v1184_v33 }
 0x135   : > { %v1552_v12 = vpop.eup %1551  ;;  %1577 = vrcp.f32 %v894_v7  ;;  %v892_v34 = vadd.f32 1.0, %v1550_v31 }
 0x136   : > { %v1554_v39 = vpop.eup %1553  ;;  %1579 = vrcp.f32 %v910_v38  ;;  %v908_v37 = vadd.f32 1.0, %v1552_v12 }
 0x137   : > { %v1556_v41 = vpop.eup %1555  ;;  %v985_v46 = vmul.f32 %v1554_v39, %v1908_v63  ;;  %1581 = vrcp.f32 %v892_v34 }
 0x138   : > { %v1558_v10 = vpop.eup %1557  ;;  %v1001_v5 = vmul.f32 %v1556_v41, %v1910_v16  ;;  %1583 = vrcp.f32 %v908_v37 }
 0x139   : > { %v1560_v18 = vpop.eup %1559  ;;  %1017 = vst [vmem:[%s1941_s12 + $0x50] sm:$0xff] %v985_v46  ;;  %v983_v47 = vmul.f32 %v1558_v10, %v1917_v24 }
 0x13a   : > { %v1562_v43 = vpop.eup %1561  ;;  %1033 = vst [vmem:[%s1941_s12 + $0xd0] sm:$0xff] %v1001_v5  ;;  %v999_v22 = vmul.f32 %v1560_v18, %v1919_v13 }
 0x13b   : > { %v1564_v51 = vpop.eup %1563  ;;  %1015 = vst [vmem:[%s1941_s12 + $0x40] sm:$0xff] %v983_v47  ;;  %v986_v63 = vmul.f32 %v1562_v43, %v1923_v35 }
 0x13c   : > { %v1566_v44 = vpop.eup %1565  ;;  %1031 = vst [vmem:[%s1941_s12 + $0xc0] sm:$0xff] %v999_v22  ;;  %v1002_v16 = vmul.f32 %v1564_v51, %v1926_v17 }
 0x13d   : > { %v1568_v25 = vpop.eup %1567  ;;  %1018 = vst [vmem:[%s1941_s12 + $0x58] sm:$0xff] %v986_v63  ;;  %v984_v24 = vmul.f32 %v1566_v44, %v1933_v8 }
 0x13e   : > { %v1570_v52 = vpop.eup %1569  ;;  %1034 = vst [vmem:[%s1941_s12 + $0xd8] sm:$0xff] %v1002_v16  ;;  %v1000_v13 = vmul.f32 %v1568_v25, %v1938_v30 }
 0x13f   : > { %v1572_v45 = vpop.eup %1571  ;;  %1016 = vst [vmem:[%s1941_s12 + $0x48] sm:$0xff] %v984_v24  ;;  %v989_v35 = vmul.f32 %v1570_v52, %v1947_v20 }
 0x140   : > { %v1574_v49 = vpop.eup %1573  ;;  %1032 = vst [vmem:[%s1941_s12 + $0xc8] sm:$0xff] %v1000_v13  ;;  %v1005_v17 = vmul.f32 %v1572_v45, %v1952_v56  ;;  %v1158_v55 = vld [vmem:[%s1941_s12 + $0x50] sm:$0xff] (%p1660_p5) }
 0x141   : > { %v1576_v50 = vpop.eup %1575  ;;  %1021 = vst [vmem:[%s1941_s12 + $0x70] sm:$0xff] %v989_v35  ;;  %v987_v8 = vmul.f32 %v1574_v49, %v1958_v11  ;;  %1159 = vst [vmem:[%s2048_s20 + $0xa0] sm:$0xff] (%p1660_p5), %v1158_v55  ;;  %v1190_v7 = vld [vmem:[%s1941_s12 + $0xd0] sm:$0xff] (%p1660_p5) }
 0x142   : > { %v1578_v59 = vpop.eup %1577  ;;  %1037 = vst [vmem:[%s1941_s12 + $0xf0] sm:$0xff] %v1005_v17  ;;  %v1003_v30 = vmul.f32 %v1576_v50, %v1963_v3  ;;  %v1138_v3 = vld [vmem:[%s1941_s12] sm:$0xff] (%p1660_p5)  ;;  %1191 = vst [vmem:[%s2048_s20 + $0x1a0] sm:$0xff] (%p1660_p5), %v1190_v7 }
 0x143   : > { %v1580_v53 = vpop.eup %1579  ;;  %1019 = vst [vmem:[%s1941_s12 + $0x60] sm:$0xff] %v987_v8  ;;  %v990_v20 = vmul.f32 %v1578_v59, %v1969_v23  ;;  %v1140_v23 = vld [vmem:[%s1941_s12 + $0x8] sm:$0xff] (%p1660_p5)  ;;  %1139 = vst [vmem:[%s2048_s20] sm:$0xff] (%p1660_p5), %v1138_v3  ;;  %v1154_v0 = vld [vmem:[%s1941_s12 + $0x40] sm:$0xff] (%p1660_p5) }
 0x144   : > { %v1582_v54 = vpop.eup %1581  ;;  %1035 = vst [vmem:[%s1941_s12 + $0xe0] sm:$0xff] %v1003_v30  ;;  %v1006_v6 = vmul.f32 %v1580_v53, %v1974_v29  ;;  %1045 = sbr.rel (!%p1660_p5) target bundleno = 337 (0x151), region = 77  ;;  %v1142_v29 = vld [vmem:[%s1941_s12 + $0x10] sm:$0xff] (%p1660_p5)  ;;  %1141 = vst [vmem:[%s2048_s20 + $0x10] sm:$0xff] (%p1660_p5), %v1140_v23  ;;  %v1160_v58 = vld [vmem:[%s1941_s12 + $0x58] sm:$0xff] (%p1660_p5) }
 0x145   : > { %v1584_v56 = vpop.eup %1583  ;;  %1022 = vst [vmem:[%s1941_s12 + $0x78] sm:$0xff] %v990_v20  ;;  %v988_v60 = vmul.f32 %v1582_v54, %v1980_v14  ;;  %v1144_v14 = vld [vmem:[%s1941_s12 + $0x18] sm:$0xff] (%p1660_p5)  ;;  %1143 = vst [vmem:[%s2048_s20 + $0x20] sm:$0xff] (%p1660_p5), %v1142_v29  ;;  %v1186_v28 = vld [vmem:[%s1941_s12 + $0xc0] sm:$0xff] (%p1660_p5) }
 0x146   : > { %1038 = vst [vmem:[%s1941_s12 + $0xf8] sm:$0xff] %v1006_v6  ;;  %v1004_v11 = vmul.f32 %v1584_v56, %v1986_v40  ;;  %v1146_v40 = vld [vmem:[%s1941_s12 + $0x20] sm:$0xff] (%p1660_p5)  ;;  %1145 = vst [vmem:[%s2048_s20 + $0x30] sm:$0xff] (%p1660_p5), %v1144_v14  ;;  %v1156_v48 = vld [vmem:[%s1941_s12 + $0x48] sm:$0xff] (%p1660_p5) }
 0x147   : > { %1020 = vst [vmem:[%s1941_s12 + $0x68] sm:$0xff] %v988_v60  ;;  %1147 = vst [vmem:[%s2048_s20 + $0x40] sm:$0xff] (%p1660_p5), %v1146_v40  ;;  %v1188_v2 = vld [vmem:[%s1941_s12 + $0xc8] sm:$0xff] (%p1660_p5)  ;;  %v1192_v31 = vld [vmem:[%s1941_s12 + $0xd8] sm:$0xff] (%p1660_p5) }
 0x148   : > { %1036 = vst [vmem:[%s1941_s12 + $0xe8] sm:$0xff] %v1004_v11  ;;  %1155 = vst [vmem:[%s2048_s20 + $0x80] sm:$0xff] (%p1660_p5), %v1154_v0  ;;  %v1166_v61 = vld [vmem:[%s1941_s12 + $0x70] sm:$0xff] (%p1660_p5) }
 0x149   : > { %1157 = vst [vmem:[%s2048_s20 + $0x90] sm:$0xff] %v1156_v48  ;;  %1161 = vst [vmem:[%s2048_s20 + $0xb0] sm:$0xff] %v1160_v58  ;;  %v1198_v34 = vld [vmem:[%s1941_s12 + $0xf0] sm:$0xff] }
 0x14a   : > { %v1162_v1 = vld [vmem:[%s1941_s12 + $0x60] sm:$0xff]  ;;  %1167 = vst [vmem:[%s2048_s20 + $0xe0] sm:$0xff] %v1166_v61  ;;  %1187 = vst [vmem:[%s2048_s20 + $0x180] sm:$0xff] %v1186_v28 }
 0x14b   : > { %1163 = vst [vmem:[%s2048_s20 + $0xc0] sm:$0xff] %v1162_v1  ;;  %1189 = vst [vmem:[%s2048_s20 + $0x190] sm:$0xff] %v1188_v2  ;;  %v1194_v38 = vld [vmem:[%s1941_s12 + $0xe0] sm:$0xff] }
 0x14c   : > { %v1168_v57 = vld [vmem:[%s1941_s12 + $0x78] sm:$0xff]  ;;  %1193 = vst [vmem:[%s2048_s20 + $0x1b0] sm:$0xff] %v1192_v31  ;;  %1195 = vst [vmem:[%s2048_s20 + $0x1c0] sm:$0xff] %v1194_v38 }
 0x14d   : > { %1169 = vst [vmem:[%s2048_s20 + $0xf0] sm:$0xff] %v1168_v57  ;;  %v1200_v39 = vld [vmem:[%s1941_s12 + $0xf8] sm:$0xff]  ;;  %1199 = vst [vmem:[%s2048_s20 + $0x1e0] sm:$0xff] %v1198_v34 }
 0x14e   : > { %v1164_v26 = vld [vmem:[%s1941_s12 + $0x68] sm:$0xff]  ;;  %1201 = vst [vmem:[%s2048_s20 + $0x1f0] sm:$0xff] %v1200_v39 }
 0x14f   : > { %1165 = vst [vmem:[%s2048_s20 + $0xd0] sm:$0xff] %v1164_v26  ;;  %v1196_v12 = vld [vmem:[%s1941_s12 + $0xe8] sm:$0xff] }
 0x150   : > { %1197 = vst [vmem:[%s2048_s20 + $0x1d0] sm:$0xff] %v1196_v12 }
 0x151 PF: > { %p10_p10 = scmp.ge.s32.totalorder %s1647_s16, 4   ;;  %s2126_s12 = smov %s1603_s13 }
 0x152   : > { %s2127_s13 = smov %s1658_s19  ;;  %s2128_s14 = smov %s1647_s16 }
 0x153   :  { %12 = sbr.rel (!%p10_p10) target bundleno = 2 (0x2), region = 146 }

</bundles_post_ra>
